<compile_context>
chip_gen: v5e
topology: v5e:2x2
jax: 0.10.0
libtpu: 0.0.40
codegen_flags: <defaults>
</compile_context>

<pallas_src>
import functools

import jax
import jax.numpy as jnp
from jax.experimental import pallas as pl
from jax.experimental.pallas import tpu as pltpu


def _round_up(x, m):
    return (x + m - 1) // m * m


def _mlp_kernel(x_ref, w1_ref, b1_ref, w2_ref, b2_ref, o_ref):
    # hidden = relu(x @ W1 + b1): bf16 MXU matmul, f32 accumulate + epilogue.
    h = jnp.dot(x_ref[...], w1_ref[...], preferred_element_type=jnp.float32)
    h = jnp.maximum(h + b1_ref[...], jnp.float32(0.0))
    # logits = hidden @ W2 + b2
    y = jnp.dot(h.astype(jnp.bfloat16), w2_ref[...],
                preferred_element_type=jnp.float32)
    o_ref[...] = (y + b2_ref[...]).astype(o_ref.dtype)


@functools.partial(jax.jit, static_argnames=("max_batch_tile",))
def net_forward(features, w1, b1, w2, b2, *, max_batch_tile=256):
    """Pallas forward: features [B, D_in] -> logits [B, D_out]."""
    B, D_in = features.shape
    D_hid = w1.shape[1]
    D_out = w2.shape[1]
    assert w1.shape == (D_in, D_hid)
    assert b1.shape == (D_hid,)
    assert w2.shape == (D_hid, D_out)
    assert b2.shape == (D_out,)

    # --- lane-dense padding of the feature dims (128-lane axis) -------------
    Hp = _round_up(D_hid, 128)
    Op = _round_up(D_out, 128)

    # --- batch tiling --------------------------------------------------------
    # Multiple of 8 sublanes; capped so double-buffered activation tiles plus
    # the VMEM-resident weights stay far below the 64 MiB v7x budget.
    TB = min(max_batch_tile, _round_up(B, 8))
    Bp = _round_up(B, TB)
    n_tiles = Bp // TB

    f32 = jnp.float32
    bf16 = jnp.bfloat16

    # Pad + cast once in the wrapper (weights loaded once, kept resident).
    x_p = jnp.pad(features, ((0, Bp - B), (0, 0))).astype(bf16)
    w1_p = jnp.pad(w1, ((0, 0), (0, Hp - D_hid))).astype(bf16)
    w2_p = jnp.pad(w2, ((0, Hp - D_hid), (0, Op - D_out))).astype(bf16)
    b1_p = jnp.pad(b1, (0, Hp - D_hid)).reshape(1, Hp).astype(f32)
    b2_p = jnp.pad(b2, (0, Op - D_out)).reshape(1, Op).astype(f32)

    out_padded = pl.pallas_call(
        _mlp_kernel,
        out_shape=jax.ShapeDtypeStruct((Bp, Op), features.dtype),
        grid_spec=pl.GridSpec(
            grid=(n_tiles,),
            in_specs=[
                # Activation stream: tiled over the batch (double-buffered).
                pl.BlockSpec((TB, D_in), lambda i: (i, 0)),
                # Weights / biases: pinned to block (0,0) -> VMEM-resident.
                pl.BlockSpec((D_in, Hp), lambda i: (0, 0)),
                pl.BlockSpec((1, Hp), lambda i: (0, 0)),
                pl.BlockSpec((Hp, Op), lambda i: (0, 0)),
                pl.BlockSpec((1, Op), lambda i: (0, 0)),
            ],
            out_specs=pl.BlockSpec((TB, Op), lambda i: (i, 0)),
        ),
        compiler_params=pltpu.CompilerParams(
            # Batch tiles are independent -> shard across v7x's 2 TensorCores.
            dimension_semantics=("parallel",),
        ),
    )(x_p, w1_p, b1_p, w2_p, b2_p)

    return out_padded[:B, :D_out]


def _init_params(key, d_in, d_hid, d_out, dtype=jnp.float32):
    """Deterministic parameter init (synthetic backbone weights)."""
    k1, k2, k3, k4 = jax.random.split(key, 4)
    w1 = jax.random.normal(k1, (d_in, d_hid), dtype) * (1.0 / jnp.sqrt(d_in))
    b1 = jax.random.normal(k2, (d_hid,), dtype) * 0.01
    w2 = jax.random.normal(k3, (d_hid, d_out), dtype) * (1.0 / jnp.sqrt(d_hid))
    b2 = jax.random.normal(k4, (d_out,), dtype) * 0.01
    return w1, b1, w2, b2


if __name__ == "__main__":
    key = jax.random.PRNGKey(0)
    k_x, k_p = jax.random.split(key)

    # Small, module-consistent shapes: batch of graphs' pooled node features.
    B, D_in, D_hid, D_out = 8, 32, 64, 16
    features = jax.random.normal(k_x, (B, D_in), jnp.float32)
    w1, b1, w2, b2 = _init_params(k_p, D_in, D_hid, D_out)

    logits = net_forward(features, w1, b1, w2, b2)
    jax.block_until_ready(logits)
    assert logits.shape == (B, D_out)

    # Reference with the same bf16-MXU / f32-accumulate math as the kernel.
    h_ref = jnp.maximum(
        jnp.dot(features.astype(jnp.bfloat16), w1.astype(jnp.bfloat16),
                preferred_element_type=jnp.float32) + b1, 0.0)
    ref = jnp.dot(h_ref.astype(jnp.bfloat16), w2.astype(jnp.bfloat16),
                  preferred_element_type=jnp.float32) + b2
    assert jnp.allclose(logits, ref, atol=1e-2, rtol=1e-2)

    # Loose check against the full-f32 reference (bf16 rounding only).
    ref_f32 = jnp.maximum(features @ w1 + b1, 0.0) @ w2 + b2
    assert jnp.allclose(logits, ref_f32, atol=5e-2, rtol=5e-2)

    print("KERNEL_OK")
</pallas_src>

<mosaic_0001>
module attributes {stable_mosaic.version = 11 : i64} {
  func.func @_mlp_kernel(%arg0: i32, %arg1: memref<8x32xbf16, #tpu.memory_space<vmem>>, %arg2: memref<32x128xbf16, #tpu.memory_space<vmem>>, %arg3: memref<1x128xf32, #tpu.memory_space<vmem>>, %arg4: memref<128x128xbf16, #tpu.memory_space<vmem>>, %arg5: memref<1x128xf32, #tpu.memory_space<vmem>>, %arg6: memref<8x128xf32, #tpu.memory_space<vmem>>) attributes {dimension_semantics = [#tpu.dimension_semantics<parallel>], iteration_bounds = array<i64: 1>, scalar_prefetch = 0 : i64, scratch_operands = 0 : i64, tpu.core_type = #tpu.core_type<tc>, window_params = [{transform_indices = @transform_0, window_bounds = array<i64: 8, 32>}, {pipeline_mode = #tpu.pipeline_mode<synchronous>, transform_indices = @transform_1, window_bounds = array<i64: 32, 128>}, {pipeline_mode = #tpu.pipeline_mode<synchronous>, transform_indices = @transform_2, window_bounds = array<i64: 1, 128>}, {pipeline_mode = #tpu.pipeline_mode<synchronous>, transform_indices = @transform_3, window_bounds = array<i64: 128, 128>}, {pipeline_mode = #tpu.pipeline_mode<synchronous>, transform_indices = @transform_4, window_bounds = array<i64: 1, 128>}, {transform_indices = @transform_5, window_bounds = array<i64: 8, 128>}]} {
    %c0 = arith.constant 0 : index
    %c0_0 = arith.constant 0 : index
    %0 = vector.load %arg1[%c0, %c0_0] : memref<8x32xbf16, #tpu.memory_space<vmem>>, vector<8x32xbf16>
    %c0_1 = arith.constant 0 : index
    %c0_2 = arith.constant 0 : index
    %1 = vector.load %arg2[%c0_1, %c0_2] : memref<32x128xbf16, #tpu.memory_space<vmem>>, vector<32x128xbf16>
    %cst = arith.constant dense<0.000000e+00> : vector<8x128xf32>
    %2 = tpu.matmul %0, %1, %cst {dimension_numbers = #tpu.dot_dimension_numbers<[1], [0], [0], [1], [0, 0, 1, 1], [], []>} : vector<8x32xbf16>, vector<32x128xbf16>, vector<8x128xf32> -> vector<8x128xf32>
    %c0_3 = arith.constant 0 : index
    %c0_4 = arith.constant 0 : index
    %3 = vector.load %arg3[%c0_3, %c0_4] : memref<1x128xf32, #tpu.memory_space<vmem>>, vector<1x128xf32>
    %4 = vector.broadcast %3 : vector<1x128xf32> to vector<8x128xf32>
    %5 = arith.addf %2, %4 : vector<8x128xf32>
    %cst_5 = arith.constant 0.000000e+00 : f32
    %6 = vector.broadcast %cst_5 : f32 to vector<8x128xf32>
    %7 = arith.maximumf %5, %6 : vector<8x128xf32>
    %8 = arith.truncf %7 : vector<8x128xf32> to vector<8x128xbf16>
    %c0_6 = arith.constant 0 : index
    %c0_7 = arith.constant 0 : index
    %9 = vector.load %arg4[%c0_6, %c0_7] : memref<128x128xbf16, #tpu.memory_space<vmem>>, vector<128x128xbf16>
    %cst_8 = arith.constant dense<0.000000e+00> : vector<8x128xf32>
    %10 = tpu.matmul %8, %9, %cst_8 {dimension_numbers = #tpu.dot_dimension_numbers<[1], [0], [0], [1], [0, 0, 1, 1], [], []>} : vector<8x128xbf16>, vector<128x128xbf16>, vector<8x128xf32> -> vector<8x128xf32>
    %c0_9 = arith.constant 0 : index
    %c0_10 = arith.constant 0 : index
    %11 = vector.load %arg5[%c0_9, %c0_10] : memref<1x128xf32, #tpu.memory_space<vmem>>, vector<1x128xf32>
    %12 = vector.broadcast %11 : vector<1x128xf32> to vector<8x128xf32>
    %13 = arith.addf %10, %12 : vector<8x128xf32>
    %c0_11 = arith.constant 0 : index
    %c0_12 = arith.constant 0 : index
    %14 = vector.load %arg6[%c0_11, %c0_12] : memref<8x128xf32, #tpu.memory_space<vmem>>, vector<8x128xf32>
    tpu.vector_store %arg6[%c0_11, %c0_12], %13 {strides = array<i32>} : memref<8x128xf32, #tpu.memory_space<vmem>>, vector<8x128xf32>,
    return
  }
  func.func @transform_0(%arg0: i32) -> (i32, i32) {
    %c0_i32 = arith.constant 0 : i32
    %c0_i32_0 = arith.constant 0 : i32
    return %arg0, %c0_i32 : i32, i32
  }
  func.func @transform_1(%arg0: i32) -> (i32, i32) {
    %c0_i32 = arith.constant 0 : i32
    %c0_i32_0 = arith.constant 0 : i32
    %c0_i32_1 = arith.constant 0 : i32
    return %c0_i32, %c0_i32_0 : i32, i32
  }
  func.func @transform_2(%arg0: i32) -> (i32, i32) {
    %c0_i32 = arith.constant 0 : i32
    %c0_i32_0 = arith.constant 0 : i32
    %c0_i32_1 = arith.constant 0 : i32
    return %c0_i32, %c0_i32_0 : i32, i32
  }
  func.func @transform_3(%arg0: i32) -> (i32, i32) {
    %c0_i32 = arith.constant 0 : i32
    %c0_i32_0 = arith.constant 0 : i32
    %c0_i32_1 = arith.constant 0 : i32
    return %c0_i32, %c0_i32_0 : i32, i32
  }
  func.func @transform_4(%arg0: i32) -> (i32, i32) {
    %c0_i32 = arith.constant 0 : i32
    %c0_i32_0 = arith.constant 0 : i32
    %c0_i32_1 = arith.constant 0 : i32
    return %c0_i32, %c0_i32_0 : i32, i32
  }
  func.func @transform_5(%arg0: i32) -> (i32, i32) {
    %c0_i32 = arith.constant 0 : i32
    %c0_i32_0 = arith.constant 0 : i32
    return %arg0, %c0_i32 : i32, i32
  }
}

</mosaic_0001>

<bundles_post_ra>
// kernel: net_forward.1
= control target key start
LH: loop header
LB: loop body
LE: loop exit
PB: predicated region body
PF: predicated region fallthrough
CT: control target
= control target key end

     0   :  { %s313_s0 = inlined_call_operand.vmem [shape: bf16[8,32], index: 0, kind: input, shape index: {}]   ;;  %s314_s1 = inlined_call_operand.vmem [shape: bf16[32,128], index: 1, kind: input, shape index: {}]   ;;  %s315_s2 = inlined_call_operand.vmem [shape: f32[1,128], index: 2, kind: input, shape index: {}]   ;;  %s316_s3 = inlined_call_operand.vmem [shape: bf16[128,128], index: 3, kind: input, shape index: {}]   ;;  %s317_s4 = inlined_call_operand.vmem [shape: f32[1,128], index: 4, kind: input, shape index: {}]   ;;  %s318_s5 = inlined_call_operand.hbm [shape: f32[8,128], index: 5, kind: output, shape index: {}]  }
   0x1   :  { %v202_v0 = vld [vmem:[%s314_s1 + $0x8] sm:$0xff]  ;;  %v210_v1 = vld [vmem:[%s316_s3 + $0x38] sm:$0xff]  ;;  %v201_v2 = vld [vmem:[%s314_s1] sm:$0xff] }
   0x2   :  { %53 = vmatpush.bf16.msra.mxu0 %v202_v0  ;;  %130 = vmatpush.bf16.msra.mxu1 %v210_v1  ;;  %v209_v3 = vld [vmem:[%s316_s3 + $0x30] sm:$0xff] }
   0x3   :  { %10 = vsyncpa [#allocation3], 0  ;;  %v22_v4 = vld [vmem:[%s313_s0] sm:$0xf]  ;;  %vm43_vm0 = vcmask 261120   ;;  %v208_v5 = vld [vmem:[%s316_s3 + $0x28] sm:$0xff] }
   0x4   :  { %v207_v6 = vld [vmem:[%s316_s3 + $0x20] sm:$0xff]  ;;  %v206_v7 = vld [vmem:[%s316_s3 + $0x18] sm:$0xff]  ;;  %v205_v8 = vld [vmem:[%s316_s3 + $0x10] sm:$0xff]  ;;  %s240_s17 = smov [#allocation2]  }
   0x5   :  { %v204_v9 = vld [vmem:[%s316_s3 + $0x8] sm:$0xff]  ;;  %v203_v10 = vld [vmem:[%s316_s3] sm:$0xff]  ;;  %s149_s18 = sshll.u32 %s240_s17, 4  ;;  %s151_s3 = sshll.u32 %s318_s5, 4  ;;  %s150_s18 = int_to_ptr.vmem [resolvable:$true] %s149_s18  ;;  %s152_s3 = int_to_ptr.hbm [resolvable:$true] %s151_s3 }
   0x6   :  { %54 = vmatpush.bf16.msra.mxu0 %v201_v2  ;;  %131 = vmatpush.bf16.msra.mxu1 %v209_v3  ;;  %v212_v11 = vld [vmem:[%s315_s2] ss:$0 sm:$0xff] }
   0x7   :  { %v213_v17 = vld [vmem:[%s317_s4] ss:$0 sm:$0xff] }
   0x9   :  { %168 = vmatmul.msk.bf16.vlgmr.msra.gmra.mxu0 %vm43_vm0, %v22_v4 }
   0xa   :  { %132 = vmatpush.bf16.msra.mxu1 %v208_v5 }
   0xe   :  { %133 = vmatpush.bf16.msra.mxu1 %v207_v6 }
  0x12   :  { %134 = vmatpush.bf16.msra.mxu1 %v206_v7 }
  0x16   :  { %135 = vmatpush.bf16.msra.mxu1 %v205_v8 }
  0x1a   :  { %136 = vmatpush.bf16.msra.mxu1 %v204_v9 }
  0x1e   :  { %137 = vmatpush.bf16.msra.mxu1 %v203_v10 }
  0x86   :  { %v56_v12 = vpop.f32.mrf.mxu0 }
  0x87   :  { %v57_v13 = vadd.f32 %v212_v11, %v56_v12 }
  0x89   :  { %v60_v14 = vmax.f32 %v57_v13, 0.0 }
  0x8b   :  { %v61_v15 = vpack.c.bf16 %v60_v14, %v60_v14 }
  0x8d   :  { %138 = vmatmul.bf16.vlgmr.msra.gmra.mxu1 %v61_v15 }
  0x8e   :  { %v58_v16 = vpop.f32.mrf.mxu0 }
 0x10a   :  { %v139_v18 = vpop.f32.mrf.mxu1 }
 0x10b   :  { %v140_v19 = vadd.f32 %v213_v17, %v139_v18 }
 0x10d   :  { %143 = vst [vmem:[#allocation2] sm:$0xff] %v140_v19 }
 0x10e   :  { %154 = dma.vmem_to_hbm [thread:$0]  %s150_s18, 128, %s152_s3, [#allocation3]  }
 0x112   :  { %v141_v20 = vpop.f32.mrf.mxu1 }
 0x113   :  { %238 = dma.done.wait [#allocation3], 128  }
 0x114   :  { %239 = vsyncadd [#allocation3], 4294967168 }
 0x115   :  { %159 = vsyncpa [#allocation3], 1 }

</bundles_post_ra>
